<compile_context>
chip_gen: v6e
topology: v6e:2x2x1
jax: 0.10.0
libtpu: 0.0.40
codegen_flags: <defaults>
</compile_context>

<pallas_src>
import jax
import jax.numpy as jnp
from jax.experimental import pallas as pl
from jax.experimental.pallas import tpu as pltpu


def _round_up(x, m):
    return ((x + m - 1) // m) * m


def _vmem_capacity_bytes():
    try:
        return int(pltpu.get_tpu_info().vmem_capacity_bytes)
    except Exception:
        return 64 * 1024 * 1024  # safe minimum across v5e/v6e/v7x


# ---------------------------------------------------------------------------
# Kernels
# ---------------------------------------------------------------------------

def _ffn_resident_kernel(x_ref, w1_ref, b1_ref, w2_ref, b2_ref, o_ref):
    """Whole weights resident in VMEM; one fused fc1 -> ReLU -> fc2 per row tile."""
    h = jnp.dot(x_ref[...], w1_ref[...], preferred_element_type=jnp.float32)
    h = jnp.maximum(h + b1_ref[...], 0.0)          # bias + ReLU in f32 (VPU)
    # (dropout = identity in eval mode)
    o = jnp.dot(h.astype(w2_ref.dtype), w2_ref[...], preferred_element_type=jnp.float32)
    o_ref[...] = (o + b2_ref[...]).astype(o_ref.dtype)
    # (dropout = identity in eval mode)


def _ffn_ktiled_kernel(x_ref, w1_ref, b1_ref, w2_ref, b2_ref, o_ref, acc_ref):
    """Hidden dim streamed in tk blocks; fc2 partials accumulated in an f32 VMEM scratch."""
    k = pl.program_id(1)

    @pl.when(k == 0)
    def _():
        acc_ref[...] = jnp.zeros_like(acc_ref)

    # fc1 chunk: [tm, dim_p] @ [dim_p, tk] on the MXU, f32 accumulation.
    h = jnp.dot(x_ref[...], w1_ref[...], preferred_element_type=jnp.float32)
    h = jnp.maximum(h + b1_ref[...], 0.0)
    # fc2 partial: [tm, tk] @ [tk, dim_p], accumulated across the hidden axis.
    acc_ref[...] += jnp.dot(h.astype(w2_ref.dtype), w2_ref[...],
                            preferred_element_type=jnp.float32)

    @pl.when(k == pl.num_programs(1) - 1)
    def _():
        o_ref[...] = (acc_ref[...] + b2_ref[...]).astype(o_ref.dtype)


# ---------------------------------------------------------------------------
# Tiling plan (static Python ints, evaluated at trace time)
# ---------------------------------------------------------------------------

def _plan_tiles(n, dim_p, hid_p, tk0, vmem_cap, in_bpe, out_bpe):
    """Pick (tm, tk, weight_resident, vmem_needed)."""
    budget = (vmem_cap * 85) // 100
    big_vmem = vmem_cap >= 100 * 1024 * 1024          # v5e/v6e (128 MiB) vs v7x (64 MiB)

    tm = min(512 if big_vmem else 256, _round_up(n, 16))
    # v7x has 2 TensorCores: split a single large row tile so both cores get work.
    if (not big_vmem) and _round_up(n, tm) == tm and n > 128:
        tm = _round_up((n + 1) // 2, 16)

    # Weight-resident variant (no hidden-dim grid axis). Conservative: assume the
    # pipeline double-buffers everything even though the weight index maps are constant.
    w_bytes = 2 * dim_p * hid_p * in_bpe + (hid_p + dim_p) * 4
    resident_bytes = 2 * (w_bytes + tm * dim_p * (in_bpe + out_bpe))
    if resident_bytes <= budget:
        return tm, hid_p, True, resident_bytes

    # K-tiled variant: shrink tk (then tm) until the double-buffered footprint fits.
    def kt_bytes(tm_, tk_):
        per_step = (tm_ * dim_p * in_bpe        # x tile
                    + dim_p * tk_ * in_bpe      # W1 column block
                    + tk_ * 4                   # b1 chunk (f32)
                    + tk_ * dim_p * in_bpe      # W2 row block
                    + dim_p * 4                 # b2 (f32)
                    + tm_ * dim_p * out_bpe)    # out tile
        return 2 * per_step + tm_ * dim_p * 4   # + f32 accumulator

    tk = tk0
    while kt_bytes(tm, tk) > budget and tk > 128 and hid_p % (tk // 2) == 0:
        tk //= 2
    while kt_bytes(tm, tk) > budget and tm > 64:
        tm = max(64, _round_up(tm // 2, 16))
    return tm, tk, False, kt_bytes(tm, tk)


# ---------------------------------------------------------------------------
# Builder: pad/cast weights once, return a jitted apply(x)
# ---------------------------------------------------------------------------

def make_feed_forward(w1, b1, w2, b2, *, mxu_dtype=jnp.bfloat16):
    """w1: [dim, hid] (already [in, out]); b1: [hid]; w2: [hid, dim]; b2: [dim]."""
    dim, hid = w1.shape
    assert w2.shape == (hid, dim) and b1.shape == (hid,) and b2.shape == (dim,)

    vmem_cap = _vmem_capacity_bytes()
    in_bpe = jnp.dtype(mxu_dtype).itemsize

    # Lane padding: 256-wide MXU on v6e/v7x (still a multiple of 128, fine on v5e);
    # keep 128 for small dims to avoid excess padding.
    dim_p = _round_up(dim, 256 if dim >= 256 else 128)
    tk0 = 1024 if vmem_cap >= 100 * 1024 * 1024 else 512
    tk0 = min(tk0, _round_up(hid, 128))
    hid_p = _round_up(hid, tk0)

    # One-time weight padding + bf16 cast (outside the per-call jitted path).
    w1p = jnp.zeros((dim_p, hid_p), mxu_dtype).at[:dim, :hid].set(w1.astype(mxu_dtype))
    w2p = jnp.zeros((hid_p, dim_p), mxu_dtype).at[:hid, :dim].set(w2.astype(mxu_dtype))
    b1p = jnp.zeros((1, hid_p), jnp.float32).at[0, :hid].set(b1.astype(jnp.float32))
    b2p = jnp.zeros((1, dim_p), jnp.float32).at[0, :dim].set(b2.astype(jnp.float32))

    @jax.jit
    def apply(x):
        orig_shape = x.shape
        out_dtype = x.dtype
        x2d = x.reshape(-1, dim)
        n = x2d.shape[0]
        out_bpe = jnp.dtype(out_dtype).itemsize

        tm, tk, resident, vmem_needed = _plan_tiles(
            n, dim_p, hid_p, tk0, vmem_cap, in_bpe, out_bpe)
        n_p = _round_up(n, tm)
        row_tiles = n_p // tm

        # Per-call activation padding only (weights were padded once at build time).
        if n_p == n and dim_p == dim:
            xp = x2d.astype(mxu_dtype)
        else:
            xp = jnp.zeros((n_p, dim_p), mxu_dtype).at[:n, :dim].set(x2d.astype(mxu_dtype))

        vmem_limit = int(min((vmem_cap * 9) // 10,
                             max(vmem_needed * 5 // 4, 32 * 1024 * 1024)))
        w_stream = 2 * dim_p * hid_p * in_bpe
        cost = pl.CostEstimate(
            flops=4 * n_p * dim_p * hid_p,
            transcendentals=0,
            bytes_accessed=(n_p * dim_p * (in_bpe + out_bpe)
                            + w_stream * (1 if resident else row_tiles)
                            + (hid_p + dim_p) * 4),
        )

        if resident:
            out = pl.pallas_call(
                _ffn_resident_kernel,
                out_shape=jax.ShapeDtypeStruct((n_p, dim_p), out_dtype),
                grid_spec=pltpu.PrefetchScalarGridSpec(
                    num_scalar_prefetch=0,
                    grid=(row_tiles,),
                    in_specs=[
                        pl.BlockSpec((tm, dim_p), lambda i: (i, 0)),      # x row tile
                        pl.BlockSpec((dim_p, hid_p), lambda i: (0, 0)),   # W1 (resident)
                        pl.BlockSpec((1, hid_p), lambda i: (0, 0)),       # b1 (f32)
                        pl.BlockSpec((hid_p, dim_p), lambda i: (0, 0)),   # W2 (resident)
                        pl.BlockSpec((1, dim_p), lambda i: (0, 0)),       # b2 (f32)
                    ],
                    out_specs=pl.BlockSpec((tm, dim_p), lambda i: (i, 0)),
                ),
                compiler_params=pltpu.CompilerParams(
                    dimension_semantics=("parallel",),
                    vmem_limit_bytes=vmem_limit,
                ),
                cost_estimate=cost,
            )(xp, w1p, b1p, w2p, b2p)
        else:
            out = pl.pallas_call(
                _ffn_ktiled_kernel,
                out_shape=jax.ShapeDtypeStruct((n_p, dim_p), out_dtype),
                grid_spec=pltpu.PrefetchScalarGridSpec(
                    num_scalar_prefetch=0,
                    grid=(row_tiles, hid_p // tk),
                    in_specs=[
                        pl.BlockSpec((tm, dim_p), lambda i, k: (i, 0)),   # x row tile
                        pl.BlockSpec((dim_p, tk), lambda i, k: (0, k)),   # W1 column block
                        pl.BlockSpec((1, tk), lambda i, k: (0, k)),       # b1 chunk (f32)
                        pl.BlockSpec((tk, dim_p), lambda i, k: (k, 0)),   # W2 row block
                        pl.BlockSpec((1, dim_p), lambda i, k: (0, 0)),    # b2 (f32)
                    ],
                    out_specs=pl.BlockSpec((tm, dim_p), lambda i, k: (i, 0)),
                    scratch_shapes=[pltpu.VMEM((tm, dim_p), jnp.float32)],  # fc2 accumulator
                ),
                compiler_params=pltpu.CompilerParams(
                    dimension_semantics=("parallel", "arbitrary"),
                    vmem_limit_bytes=vmem_limit,
                ),
                cost_estimate=cost,
            )(xp, w1p, b1p, w2p, b2p)

        return out[:n, :dim].reshape(orig_shape)

    return apply


def init_feed_forward_params(key, dim, hid_dim, dtype=jnp.float32):
    """Deterministic init mimicking nn.Linear default (uniform(-1/sqrt(fan_in), 1/sqrt(fan_in)))."""
    k1, k2, k3, k4 = jax.random.split(key, 4)
    bound1 = 1.0 / jnp.sqrt(jnp.asarray(dim, jnp.float32))
    bound2 = 1.0 / jnp.sqrt(jnp.asarray(hid_dim, jnp.float32))
    # Stored already transposed to [in, out] for the kernel.
    w1 = jax.random.uniform(k1, (dim, hid_dim), dtype, -bound1, bound1)
    b1 = jax.random.uniform(k2, (hid_dim,), dtype, -bound1, bound1)
    w2 = jax.random.uniform(k3, (hid_dim, dim), dtype, -bound2, bound2)
    b2 = jax.random.uniform(k4, (dim,), dtype, -bound2, bound2)
    return w1, b1, w2, b2


if __name__ == "__main__":
    # Small shapes consistent with the module: tokens x feature dim.
    batch, seq, dim, hid_dim = 2, 8, 32, 64
    key = jax.random.PRNGKey(0)
    kx, kp = jax.random.split(key)

    x = jax.random.normal(kx, (batch, seq, dim), jnp.float32)
    w1, b1, w2, b2 = init_feed_forward_params(kp, dim, hid_dim)

    ffn = make_feed_forward(w1, b1, w2, b2)
    out = jax.block_until_ready(ffn(x))

    # Reference in plain JAX mirroring the kernel's arithmetic (bf16 MXU operands,
    # f32 accumulation, f32 bias/ReLU; dropout = identity in eval mode).
    x2d = x.reshape(-1, dim).astype(jnp.bfloat16)
    h_ref = jnp.maximum(
        jnp.dot(x2d, w1.astype(jnp.bfloat16), preferred_element_type=jnp.float32) + b1, 0.0)
    ref = (jnp.dot(h_ref.astype(jnp.bfloat16), w2.astype(jnp.bfloat16),
                   preferred_element_type=jnp.float32) + b2).reshape(batch, seq, dim)

    assert out.shape == (batch, seq, dim)
    assert jnp.allclose(out, ref, atol=2e-3, rtol=2e-3), float(jnp.max(jnp.abs(out - ref)))

    print("KERNEL_OK")
</pallas_src>

<mosaic_0001>
module attributes {stable_mosaic.version = 11 : i64} {
  func.func @_ffn_resident_kernel(%arg0: i32, %arg1: memref<16x128xbf16, #tpu.memory_space<vmem>>, %arg2: memref<128x128xbf16, #tpu.memory_space<vmem>>, %arg3: memref<1x128xf32, #tpu.memory_space<vmem>>, %arg4: memref<128x128xbf16, #tpu.memory_space<vmem>>, %arg5: memref<1x128xf32, #tpu.memory_space<vmem>>, %arg6: memref<16x128xf32, #tpu.memory_space<vmem>>) attributes {dimension_semantics = [#tpu.dimension_semantics<parallel>], iteration_bounds = array<i64: 1>, scalar_prefetch = 0 : i64, scratch_operands = 0 : i64, tpu.core_type = #tpu.core_type<tc>, window_params = [{transform_indices = @transform_0, window_bounds = array<i64: 16, 128>}, {pipeline_mode = #tpu.pipeline_mode<synchronous>, transform_indices = @transform_1, window_bounds = array<i64: 128, 128>}, {pipeline_mode = #tpu.pipeline_mode<synchronous>, transform_indices = @transform_2, window_bounds = array<i64: 1, 128>}, {pipeline_mode = #tpu.pipeline_mode<synchronous>, transform_indices = @transform_3, window_bounds = array<i64: 128, 128>}, {pipeline_mode = #tpu.pipeline_mode<synchronous>, transform_indices = @transform_4, window_bounds = array<i64: 1, 128>}, {transform_indices = @transform_5, window_bounds = array<i64: 16, 128>}]} {
    %c0 = arith.constant 0 : index
    %c0_0 = arith.constant 0 : index
    %0 = vector.load %arg1[%c0, %c0_0] : memref<16x128xbf16, #tpu.memory_space<vmem>>, vector<16x128xbf16>
    %c0_1 = arith.constant 0 : index
    %c0_2 = arith.constant 0 : index
    %1 = vector.load %arg2[%c0_1, %c0_2] : memref<128x128xbf16, #tpu.memory_space<vmem>>, vector<128x128xbf16>
    %cst = arith.constant dense<0.000000e+00> : vector<16x128xf32>
    %2 = tpu.matmul %0, %1, %cst {dimension_numbers = #tpu.dot_dimension_numbers<[1], [0], [0], [1], [0, 0, 1, 1], [], []>} : vector<16x128xbf16>, vector<128x128xbf16>, vector<16x128xf32> -> vector<16x128xf32>
    %c0_3 = arith.constant 0 : index
    %c0_4 = arith.constant 0 : index
    %3 = vector.load %arg3[%c0_3, %c0_4] : memref<1x128xf32, #tpu.memory_space<vmem>>, vector<1x128xf32>
    %4 = vector.broadcast %3 : vector<1x128xf32> to vector<16x128xf32>
    %5 = arith.addf %2, %4 : vector<16x128xf32>
    %cst_5 = arith.constant 0.000000e+00 : f32
    %6 = vector.broadcast %cst_5 : f32 to vector<16x128xf32>
    %7 = arith.maximumf %5, %6 : vector<16x128xf32>
    %8 = arith.truncf %7 : vector<16x128xf32> to vector<16x128xbf16>
    %c0_6 = arith.constant 0 : index
    %c0_7 = arith.constant 0 : index
    %9 = vector.load %arg4[%c0_6, %c0_7] : memref<128x128xbf16, #tpu.memory_space<vmem>>, vector<128x128xbf16>
    %cst_8 = arith.constant dense<0.000000e+00> : vector<16x128xf32>
    %10 = tpu.matmul %8, %9, %cst_8 {dimension_numbers = #tpu.dot_dimension_numbers<[1], [0], [0], [1], [0, 0, 1, 1], [], []>} : vector<16x128xbf16>, vector<128x128xbf16>, vector<16x128xf32> -> vector<16x128xf32>
    %c0_9 = arith.constant 0 : index
    %c0_10 = arith.constant 0 : index
    %11 = vector.load %arg5[%c0_9, %c0_10] : memref<1x128xf32, #tpu.memory_space<vmem>>, vector<1x128xf32>
    %12 = vector.broadcast %11 : vector<1x128xf32> to vector<16x128xf32>
    %13 = arith.addf %10, %12 : vector<16x128xf32>
    %c0_11 = arith.constant 0 : index
    %c0_12 = arith.constant 0 : index
    %14 = vector.load %arg6[%c0_11, %c0_12] : memref<16x128xf32, #tpu.memory_space<vmem>>, vector<16x128xf32>
    tpu.vector_store %arg6[%c0_11, %c0_12], %13 {strides = array<i32>} : memref<16x128xf32, #tpu.memory_space<vmem>>, vector<16x128xf32>,
    return
  }
  func.func @transform_0(%arg0: i32) -> (i32, i32) {
    %c0_i32 = arith.constant 0 : i32
    %c0_i32_0 = arith.constant 0 : i32
    return %arg0, %c0_i32 : i32, i32
  }
  func.func @transform_1(%arg0: i32) -> (i32, i32) {
    %c0_i32 = arith.constant 0 : i32
    %c0_i32_0 = arith.constant 0 : i32
    %c0_i32_1 = arith.constant 0 : i32
    return %c0_i32, %c0_i32_0 : i32, i32
  }
  func.func @transform_2(%arg0: i32) -> (i32, i32) {
    %c0_i32 = arith.constant 0 : i32
    %c0_i32_0 = arith.constant 0 : i32
    %c0_i32_1 = arith.constant 0 : i32
    return %c0_i32, %c0_i32_0 : i32, i32
  }
  func.func @transform_3(%arg0: i32) -> (i32, i32) {
    %c0_i32 = arith.constant 0 : i32
    %c0_i32_0 = arith.constant 0 : i32
    %c0_i32_1 = arith.constant 0 : i32
    return %c0_i32, %c0_i32_0 : i32, i32
  }
  func.func @transform_4(%arg0: i32) -> (i32, i32) {
    %c0_i32 = arith.constant 0 : i32
    %c0_i32_0 = arith.constant 0 : i32
    %c0_i32_1 = arith.constant 0 : i32
    return %c0_i32, %c0_i32_0 : i32, i32
  }
  func.func @transform_5(%arg0: i32) -> (i32, i32) {
    %c0_i32 = arith.constant 0 : i32
    %c0_i32_0 = arith.constant 0 : i32
    return %arg0, %c0_i32 : i32, i32
  }
}

</mosaic_0001>

<bundles_post_ra>
// kernel: apply.1
= control target key start
LH: loop header
LB: loop body
LE: loop exit
PB: predicated region body
PF: predicated region fallthrough
CT: control target
= control target key end

     0   :  { %10 = vsyncpa [#allocation3], 0  ;;  %s493_s0 = inlined_call_operand.vmem [shape: bf16[16,128], index: 0, kind: input, shape index: {}]   ;;  %s494_s1 = inlined_call_operand.hbm [shape: bf16[128,128], index: 1, kind: input, shape index: {}]   ;;  %s495_s2 = inlined_call_operand.vmem [shape: f32[1,128], index: 2, kind: input, shape index: {}]   ;;  %s496_s3 = inlined_call_operand.hbm [shape: bf16[128,128], index: 3, kind: input, shape index: {}]   ;;  %s497_s4 = inlined_call_operand.vmem [shape: f32[1,128], index: 4, kind: input, shape index: {}]   ;;  %s498_s5 = inlined_call_operand.vmem [shape: f32[16,128], index: 5, kind: output, shape index: {}]  }
   0x1   :  { %11 = vsyncpa [#allocation5], 0  ;;  %s436_s18 = smov [#allocation2]  }
   0x2   :  { %s19_s19 = sshll.u32 %s436_s18, 4  ;;  %s20_s19 = int_to_ptr.vmem [resolvable:$true] %s19_s19 }
   0x3   :  { %s400_s20 = scalar_lea.vmem %s20_s19, 1024  ;;  %p405_p1 = scmp.lt.s32.totalorder %s20_s19, %s20_s19 }
   0x4   :  { %p401_p0 = scmp.ne.s32.totalorder %s20_s19, %s400_s20  ;;  %p406_p2 = scmp.lt.s32.totalorder %s400_s20, %s400_s20 }
   0x6   :  { %p407_p3 = por %p406_p2, %p405_p1 }
   0x8   :  { %p408_p4 = pnand %p407_p3, %p401_p0 }
   0xa   :  { %411 = shalt.err (!%p408_p4)
}
   0xb   :  { %s437_s21 = smov 64   ;;  %s438_s22 = smov 4  }
   0xc   :  { %25 = dma.hbm_to_vmem [thread:$0]  %s494_s1, 1024, %s20_s19, [#allocation3], %s437_s21, %s437_s21, %s438_s22  }
   0xd   :  { %s439_s25 = smov [#allocation4]  }
   0xe   :  { %s33_s26 = sshll.u32 %s439_s25, 4  ;;  %s34_s26 = int_to_ptr.vmem [resolvable:$true] %s33_s26 }
   0xf   :  { %s420_s27 = scalar_lea.vmem %s34_s26, 1024  ;;  %p425_p6 = scmp.lt.s32.totalorder %s34_s26, %s34_s26 }
  0x10   :  { %p421_p5 = scmp.ne.s32.totalorder %s34_s26, %s420_s27  ;;  %p426_p7 = scmp.lt.s32.totalorder %s420_s27, %s420_s27 }
  0x12   :  { %p427_p8 = por %p426_p7, %p425_p6 }
  0x14   :  { %p428_p9 = pnand %p427_p8, %p421_p5 }
  0x16   :  { %431 = shalt.err (!%p428_p9)
}
  0x17   :  { %39 = dma.hbm_to_vmem [thread:$0]  %s496_s3, 1024, %s34_s26, [#allocation5], %s437_s21, %s437_s21, %s438_s22  }
  0x18   :  { %432 = dma.done.wait [#allocation3], 1024  }
  0x19   :  { %433 = vsyncadd [#allocation3], 4294966272 }
  0x1a   :  { %434 = dma.done.wait [#allocation5], 1024  }
  0x1b   :  { %435 = vsyncadd [#allocation5], 4294966272  ;;  %v440_v0 = vmov 0.0   ;;  %vm441_vm0 = vmmov 0   ;;  %v375_v1 = vld [vmem:[#allocation2 + $0x38] sm:$0xff]   ;;  %v376_v2 = vld [vmem:[#allocation2 + $0x30] sm:$0xff]  }
  0x1c   :  { %329 = vmatprep.subr.bf16.mxu0 %v440_v0  ;;  %345 = vmatprep.mubr.msk.bf16.mxu0 %vm441_vm0, %v440_v0  ;;  %v377_v3 = vld [vmem:[#allocation2 + $0x28] sm:$0xff]   ;;  %v384_v4 = vld [vmem:[#allocation4 + $0x38] sm:$0xff]   ;;  %v378_v5 = vld [vmem:[#allocation2 + $0x20] sm:$0xff]  }
  0x1d   :  { %349 = vmatprep.subr.bf16.mxu1 %v440_v0  ;;  %365 = vmatprep.mubr.msk.bf16.mxu1 %vm441_vm0, %v440_v0  ;;  %v385_v6 = vld [vmem:[#allocation4 + $0x30] sm:$0xff]   ;;  %v379_v7 = vld [vmem:[#allocation2 + $0x18] sm:$0xff]   ;;  %v386_v8 = vld [vmem:[#allocation4 + $0x28] sm:$0xff]  }
  0x1e   :  { %330 = vmatpush3.bf16.msra.mxu0 %v375_v1  ;;  %350 = vmatpush3.bf16.msra.mxu1 %v384_v4  ;;  %v380_v9 = vld [vmem:[#allocation2 + $0x10] sm:$0xff]   ;;  %v387_v10 = vld [vmem:[#allocation4 + $0x20] sm:$0xff]   ;;  %v381_v11 = vld [vmem:[#allocation2 + $0x8] sm:$0xff]  }
  0x1f   :  { %331 = vmatprep.subr.bf16.mxu0 %v440_v0  ;;  %351 = vmatprep.subr.bf16.mxu1 %v440_v0  ;;  %v388_v12 = vld [vmem:[#allocation4 + $0x18] sm:$0xff]   ;;  %v382_v13 = vld [vmem:[#allocation2] sm:$0xff]   ;;  %v389_v15 = vld [vmem:[#allocation4 + $0x10] sm:$0xff]  }
  0x20   :  { %v383_v14 = vld [vmem:[%s493_s0] sm:$0xff]   ;;  %v390_v16 = vld [vmem:[#allocation4 + $0x8] sm:$0xff]  }
  0x21   :  { %v391_v17 = vld [vmem:[#allocation4] sm:$0xff]  }
  0x22   :  { %332 = vmatpush3.bf16.msra.mxu0 %v376_v2  ;;  %352 = vmatpush3.bf16.msra.mxu1 %v385_v6  ;;  %v292_v18 = vld [vmem:[%s495_s2] ss:$0 sm:$0xff] }
  0x23   :  { %333 = vmatprep.subr.bf16.mxu0 %v440_v0  ;;  %353 = vmatprep.subr.bf16.mxu1 %v440_v0  ;;  %v302_v28 = vld [vmem:[%s497_s4] ss:$0 sm:$0xff] }
  0x26   :  { %334 = vmatpush3.bf16.msra.mxu0 %v377_v3  ;;  %354 = vmatpush3.bf16.msra.mxu1 %v386_v8 }
  0x27   :  { %335 = vmatprep.subr.bf16.mxu0 %v440_v0  ;;  %355 = vmatprep.subr.bf16.mxu1 %v440_v0 }
  0x2a   :  { %336 = vmatpush3.bf16.msra.mxu0 %v378_v5  ;;  %356 = vmatpush3.bf16.msra.mxu1 %v387_v10 }
  0x2b   :  { %337 = vmatprep.subr.bf16.mxu0 %v440_v0  ;;  %357 = vmatprep.subr.bf16.mxu1 %v440_v0 }
  0x2e   :  { %338 = vmatpush3.bf16.msra.mxu0 %v379_v7  ;;  %358 = vmatpush3.bf16.msra.mxu1 %v388_v12 }
  0x2f   :  { %339 = vmatprep.subr.bf16.mxu0 %v440_v0  ;;  %359 = vmatprep.subr.bf16.mxu1 %v440_v0 }
  0x32   :  { %340 = vmatpush3.bf16.msra.mxu0 %v380_v9  ;;  %360 = vmatpush3.bf16.msra.mxu1 %v389_v15 }
  0x33   :  { %341 = vmatprep.subr.bf16.mxu0 %v440_v0  ;;  %361 = vmatprep.subr.bf16.mxu1 %v440_v0 }
  0x36   :  { %342 = vmatpush3.bf16.msra.mxu0 %v381_v11  ;;  %362 = vmatpush3.bf16.msra.mxu1 %v390_v16 }
  0x37   :  { %343 = vmatprep.subr.bf16.mxu0 %v440_v0  ;;  %363 = vmatprep.subr.bf16.mxu1 %v440_v0 }
  0x3a   :  { %344 = vmatpush3.bf16.msra.mxu0 %v382_v13  ;;  %364 = vmatpush3.bf16.msra.mxu1 %v391_v17 }
  0x3d   :  { %346 = vmatmul.mubr.bf16.vlgmr.msra.gmra.mxu0 %v383_v14 }
  0xfd   :  { %v162_v19 = vpop.f32.mrf.mxu0 }
  0xfe   :  { %v163_v21 = vadd.f32 %v292_v18, %v162_v19 }
  0xff   :  { %v347_v20 = vpop.f32.mrf.mxu0 }
 0x100   :  { %v169_v25 = vmax.f32 %v163_v21, 0.0 }
 0x101   :  { %v165_v22 = vpop.f32.mrf.mxu0 }
 0x102   :  { %v166_v23 = vadd.f32 %v292_v18, %v165_v22 }
 0x103   :  { %v348_v24 = vpop.f32.mrf.mxu0 }
 0x104   :  { %v170_v26 = vmax.f32 %v166_v23, 0.0 }
 0x106   :  { %v171_v27 = vpack.c.bf16 %v170_v26, %v169_v25 }
 0x108   :  { %366 = vmatmul.mubr.bf16.vlgmr.msra.gmra.mxu1 %v171_v27 }
 0x1c8   :  { %v277_v29 = vpop.f32.mrf.mxu1 }
 0x1c9   :  { %v278_v30 = vadd.f32 %v302_v28, %v277_v29 }
 0x1ca   :  { %v367_v31 = vpop.f32.mrf.mxu1 }
 0x1cb   :  { %284 = vst [vmem:[%s498_s5] sm:$0xff] %v278_v30 }
 0x1cc   :  { %v280_v32 = vpop.f32.mrf.mxu1 }
 0x1cd   :  { %v281_v33 = vadd.f32 %v302_v28, %v280_v32 }
 0x1ce   :  { %v368_v34 = vpop.f32.mrf.mxu1 }
 0x1cf   :  { %285 = vst [vmem:[%s498_s5 + $0x8] sm:$0xff] %v281_v33 }
 0x1d0   :  { %290 = vsyncpa [#allocation3], 1 }
 0x1d1   :  { %291 = vsyncpa [#allocation5], 1 }

</bundles_post_ra>
